<compile_context>
chip_gen: v7x
topology: tpu7x:2x2x1
jax: 0.10.0
libtpu: 0.0.40
codegen_flags: <defaults>
</compile_context>

<pallas_src>
import math

import jax
import jax.numpy as jnp
from jax.experimental import pallas as pl
from jax.experimental.pallas import tpu as pltpu


# ---------------------------------------------------------------------------
# Kernel: one grid step = (batch b, chunk c, point-tile t)
# ---------------------------------------------------------------------------
def _transform_net_kernel(x_ref, w1_ref, b1_ref, w2_ref, b2_ref, w3_ref, b3_ref,
                          out_ref):
    t = pl.program_id(2)

    def lrelu(h):
        return jnp.where(h >= 0.0, h, 0.2 * h)   # LeakyReLU(0.2)

    # Input tile (K-major): (K, tn, 6) bf16.  The 6-wide last dim is lane-padded;
    # accepted — conv1 is ~4% of FLOPs (see review item on the ones-column trick).
    x = x_ref[0]
    K, tn, cin = x.shape
    rows = K * tn

    # conv1: Conv2d(6->64, k=1); BN scale pre-folded into w1, shift is b1.
    h = jnp.dot(x.reshape(rows, cin), w1_ref[...], preferred_element_type=jnp.float32)
    h = lrelu(h + b1_ref[...])                                   # (rows, 64) f32
    # conv2: Conv2d(64->128, k=1)
    h = jnp.dot(h.astype(jnp.bfloat16), w2_ref[...],
                preferred_element_type=jnp.float32)
    h = lrelu(h + b2_ref[...])                                   # (rows, 128) f32
    # k-neighbor max (PyTorch x.max(dim=-1)): elementwise VPU max over K slabs
    # of (tn, 128) — layout-preserving for any K.
    h = jnp.max(h.reshape(K, tn, h.shape[-1]), axis=0)           # (tn, 128)
    # conv3: Conv1d(128->1024, k=1)
    h = jnp.dot(h.astype(jnp.bfloat16), w3_ref[...],
                preferred_element_type=jnp.float32)
    h = lrelu(h + b3_ref[...])                                   # (tn, 1024) f32

    # Tile-local point-max folded as (8, 1024) sublane slabs (VPU-only); the
    # 8->1 collapse happens once per batch element outside the kernel.
    if tn % 8 == 0:
        local = jnp.max(h.reshape(tn // 8, 8, h.shape[-1]), axis=0)       # (8, 1024)
    else:  # tile == full N and N % 8 != 0: fall back to a single cross-sublane reduce
        local = jnp.broadcast_to(jnp.max(h, axis=0, keepdims=True), (8, h.shape[-1]))

    # Running max over the point tiles of this (b, c) accumulates directly into the
    # resident output block.
    @pl.when(t == 0)
    def _():
        out_ref[...] = jnp.full(out_ref.shape, -jnp.inf, jnp.float32)

    out_ref[...] = jnp.maximum(out_ref[...], local[None, None])


# ---------------------------------------------------------------------------
# Tiling / VMEM heuristics
# ---------------------------------------------------------------------------
def _pick_tile_n(N, K, act_budget_bytes=24 << 20):
    """Largest multiple-of-8 divisor of N whose per-step VMEM footprint fits the
    activation budget (grow tiles to amortize MXU weight pushes & grid overhead)."""
    # per-point bytes per grid step: lane-padded bf16 input (double-buffered) +
    # conv1/conv2 intermediates (f32 + bf16 copies) + conv3 row (f32 + bf16).
    per_point = K * 128 * 2 * 2 + K * (64 + 128) * 6 + (128 + 1024) * 6
    max_tn = max(8, act_budget_bytes // per_point)
    best = None
    for tn in range(8, N + 1, 8):
        if N % tn == 0 and tn <= max_tn:
            best = tn
    if best is None:
        best = N   # full axis still satisfies the BlockSpec (8,128) rule
    return best


def _physical_vmem_bytes():
    try:
        return int(getattr(pltpu.get_tpu_info(), "vmem_capacity_bytes", 64 << 20))
    except Exception:
        return 64 << 20


def _vmem_limit_bytes(K, tile_n, kernel_weights):
    """Scoped-VMEM request sized from actual buffers, clamped at ~75% of the chip's
    physical VMEM (≈48 MiB on v7x, ≈96 MiB on v5e/v6e)."""
    cap = (_physical_vmem_bytes() * 3) // 4
    wbytes = 2 * sum(int(w.size) * w.dtype.itemsize for w in kernel_weights)  # 2x buffered
    xtile = 2 * K * tile_n * 128 * 2                  # double-buffered bf16 input, lane-padded
    acts = K * tile_n * (64 + 128) * 6 + tile_n * (128 + 1024) * 6
    total = wbytes + xtile + acts + (8 << 20)         # compiler-scratch headroom
    return int(max(16 << 20, min(cap, total)))


# ---------------------------------------------------------------------------
# Parameter prep (offline: BN fold + bf16 cast)
# ---------------------------------------------------------------------------
def prepare_params(p):
    """Fold the inference-mode BN scale into each weight and cast matmul operands to
    bf16; shifts stay as f32 (1, C) rows.  Call once per model, outside the hot path."""
    bf = jnp.bfloat16

    def fold(w, sb):
        return ((w * sb[0][None, :]).astype(bf),
                sb[1].reshape(1, -1).astype(jnp.float32))

    w1, b1 = fold(p["w1"], p["sb1"])
    w2, b2 = fold(p["w2"], p["sb2"])
    w3, b3 = fold(p["w3"], p["sb3"])
    w4, b4 = fold(p["w4"], p["sb4"])
    w5, b5 = fold(p["w5"], p["sb5"])
    return dict(w1=w1, b1=b1, w2=w2, b2=b2, w3=w3, b3=b3,
                w4=w4, b4=b4, w5=w5, b5=b5,
                w6=p["w6"].astype(bf), b6=p["b6"].astype(jnp.float32))


# ---------------------------------------------------------------------------
# Forward
# ---------------------------------------------------------------------------
def transform_net_forward_kmajor(x_kmaj, prepared, *, tile_n=None, n_chunks=None):
    """x_kmaj: (B, K, N, 6) channels-last edge features; prepared = prepare_params(...).
    Returns (B, 3, 3)."""
    B, K, N, C = x_kmaj.shape
    assert C == 6
    x_kmaj = x_kmaj.astype(jnp.bfloat16)

    if tile_n is None:
        tile_n = _pick_tile_n(N, K)
    assert N % tile_n == 0, "tile_n must divide N"
    n_tiles = N // tile_n

    if n_chunks is None:
        # keep both v7x TensorCores busy when the batch axis alone can't
        n_chunks = 2 if (B % 2 == 1 and n_tiles % 2 == 0) else 1
    assert n_tiles % n_chunks == 0, "n_chunks must divide the number of N-tiles"
    tiles_per_chunk = n_tiles // n_chunks

    kweights = (prepared["w1"], prepared["b1"], prepared["w2"], prepared["b2"],
                prepared["w3"], prepared["b3"])

    x_spec = pl.BlockSpec((1, K, tile_n, C),
                          lambda b, c, t: (b, 0, c * tiles_per_chunk + t, 0))
    # Weights are small (~280 KB total) now that the FC head is hoisted, so default
    # double-buffering is left in place (single-buffering would save <300 KB).
    w_specs = [pl.BlockSpec(tuple(w.shape), lambda b, c, t: (0, 0)) for w in kweights]
    out_spec = pl.BlockSpec((1, 1, 8, 1024), lambda b, c, t: (b, c, 0, 0))

    flops = 2 * B * N * K * (6 * 64 + 64 * 128) + 2 * B * N * 128 * 1024
    bytes_accessed = (int(x_kmaj.size) * 2
                      + sum(int(w.size) * w.dtype.itemsize for w in kweights)
                      + B * n_chunks * 8 * 1024 * 4)

    part = pl.pallas_call(
        _transform_net_kernel,
        out_shape=jax.ShapeDtypeStruct((B, n_chunks, 8, 1024), jnp.float32),
        grid_spec=pltpu.PrefetchScalarGridSpec(
            num_scalar_prefetch=0,
            grid=(B, n_chunks, tiles_per_chunk),
            in_specs=[x_spec] + w_specs,
            out_specs=out_spec,
        ),
        compiler_params=pltpu.CompilerParams(
            dimension_semantics=("parallel", "parallel", "arbitrary"),
            vmem_limit_bytes=_vmem_limit_bytes(K, tile_n, kweights),
        ),
        cost_estimate=pl.CostEstimate(flops=int(flops), transcendentals=0,
                                      bytes_accessed=int(bytes_accessed)),
    )(x_kmaj, *kweights)

    # Global point max: collapse chunk + sublane-slab axes (tiny: B x 8*n_chunks x 1024).
    g = jnp.max(part, axis=(1, 2))                                # (B, 1024) f32

    # FC head (hoisted): batched over B so w4/w5/w6 weight pushes amortize across B.
    def lrelu(h):
        return jnp.where(h >= 0.0, h, 0.2 * h)

    h = lrelu(jnp.dot(g.astype(jnp.bfloat16), prepared["w4"],
                      preferred_element_type=jnp.float32) + prepared["b4"])   # (B, 512)
    h = lrelu(jnp.dot(h.astype(jnp.bfloat16), prepared["w5"],
                      preferred_element_type=jnp.float32) + prepared["b5"])   # (B, 256)
    out = jnp.dot(h.astype(jnp.bfloat16), prepared["w6"],
                  preferred_element_type=jnp.float32) + prepared["b6"]        # (B, 9)
    return out.reshape(B, 3, 3)


def transform_net_forward(x, params, *, tile_n=None, n_chunks=None):
    """Convenience entry matching the PyTorch layout: x (B, 6, N, K) f32, raw params.
    Returns (B, 3, 3)."""
    # TODO(synk): have the producer emit channels-last (B, K, N, 6) directly and call
    # prepare_params once per model to avoid this per-call transpose / weight re-cast.
    prepared = prepare_params(params)
    x_kmaj = jnp.transpose(x, (0, 3, 2, 1))            # (B, K, N, 6)
    return transform_net_forward_kmajor(x_kmaj, prepared, tile_n=tile_n,
                                        n_chunks=n_chunks)


# ---------------------------------------------------------------------------
# Synthetic params + references
# ---------------------------------------------------------------------------
def init_params(key):
    """Deterministic synthetic parameters matching Transform_Net.__init__ shapes."""
    eps = 1e-5

    def bn_sb(k, c):
        kg, kb = jax.random.split(k)
        gamma = 1.0 + 0.1 * jax.random.normal(kg, (c,), jnp.float32)
        beta = 0.1 * jax.random.normal(kb, (c,), jnp.float32)
        scale = gamma / jnp.sqrt(1.0 + eps)   # inference BN: running_mean=0, running_var=1
        shift = beta
        return jnp.stack([scale, shift], axis=0)  # (2, c)

    def mat(k, cin, cout):
        return jax.random.normal(k, (cin, cout), jnp.float32) / math.sqrt(cin)

    ks = jax.random.split(key, 10)
    return {
        "w1": mat(ks[0], 6, 64),      "sb1": bn_sb(ks[1], 64),
        "w2": mat(ks[2], 64, 128),    "sb2": bn_sb(ks[3], 128),
        "w3": mat(ks[4], 128, 1024),  "sb3": bn_sb(ks[5], 1024),
        "w4": mat(ks[6], 1024, 512),  "sb4": bn_sb(ks[7], 512),
        "w5": mat(ks[8], 512, 256),   "sb5": bn_sb(ks[9], 256),
        # transform layer: weight = 0, bias = flattened 3x3 identity (as in __init__)
        "w6": jnp.zeros((256, 9), jnp.float32),
        "b6": jnp.eye(3, dtype=jnp.float32).reshape(1, 9),
    }


def _bn_lrelu_ref(h, sb):
    h = h * sb[0] + sb[1]
    return jnp.where(h >= 0.0, h, 0.2 * h)


def ref_forward_f32(x, p):
    """Pure-f32 JAX reference mirroring the PyTorch forward (inference-mode BN)."""
    B, C, N, K = x.shape
    r = jnp.transpose(x, (0, 2, 3, 1)).reshape(B * N * K, C)
    h = _bn_lrelu_ref(r @ p["w1"], p["sb1"])
    h = _bn_lrelu_ref(h @ p["w2"], p["sb2"])
    h = jnp.max(h.reshape(B * N, K, -1), axis=1)
    h = _bn_lrelu_ref(h @ p["w3"], p["sb3"])
    h = jnp.max(h.reshape(B, N, -1), axis=1)
    h = _bn_lrelu_ref(h @ p["w4"], p["sb4"])
    h = _bn_lrelu_ref(h @ p["w5"], p["sb5"])
    out = h @ p["w6"] + p["b6"]
    return out.reshape(B, 3, 3)


def ref_forward_mixed(x, prepared):
    """Plain-JAX mirror of the kernel math: BN folded into bf16 weights, f32 accumulation."""
    bf, f32 = jnp.bfloat16, jnp.float32
    lrelu = lambda h: jnp.where(h >= 0.0, h, 0.2 * h)
    B, C, N, K = x.shape
    r = jnp.transpose(x, (0, 3, 2, 1)).reshape(B * K * N, C).astype(bf)
    h = lrelu(jnp.dot(r, prepared["w1"], preferred_element_type=f32) + prepared["b1"])
    h = lrelu(jnp.dot(h.astype(bf), prepared["w2"], preferred_element_type=f32) + prepared["b2"])
    h = jnp.max(h.reshape(B, K, N, -1), axis=1).reshape(B * N, -1)
    h = lrelu(jnp.dot(h.astype(bf), prepared["w3"], preferred_element_type=f32) + prepared["b3"])
    h = jnp.max(h.reshape(B, N, -1), axis=1)
    h = lrelu(jnp.dot(h.astype(bf), prepared["w4"], preferred_element_type=f32) + prepared["b4"])
    h = lrelu(jnp.dot(h.astype(bf), prepared["w5"], preferred_element_type=f32) + prepared["b5"])
    out = jnp.dot(h.astype(bf), prepared["w6"], preferred_element_type=f32) + prepared["b6"]
    return out.reshape(B, 3, 3)


# ---------------------------------------------------------------------------
if __name__ == "__main__":
    key = jax.random.PRNGKey(0)
    kx, kp, kw = jax.random.split(key, 3)

    B, N, K = 2, 16, 8                                    # batch, num_points, k-neighbors
    x = jax.random.normal(kx, (B, 6, N, K), jnp.float32)  # NCHW like PyTorch
    params = init_params(kp)
    prepared = prepare_params(params)                     # offline weight prep
    x_kmaj = jnp.transpose(x, (0, 3, 2, 1))               # (B, K, N, 6) channels-last

    # default tiling (single N-tile at this size) via the NCHW convenience wrapper
    out = jax.block_until_ready(transform_net_forward(x, params))
    # small tiles: exercises the multi-step running-max / pl.when(t==0) init path
    out_tiled = jax.block_until_ready(
        transform_net_forward_kmajor(x_kmaj, prepared, tile_n=8, n_chunks=1))
    # chunked reduction axis: exercises the 2-parallel-chunk (v7x 2-TC) path
    out_chunk = jax.block_until_ready(
        transform_net_forward_kmajor(x_kmaj, prepared, tile_n=8, n_chunks=2))

    eye = jnp.broadcast_to(jnp.eye(3, dtype=jnp.float32), (B, 3, 3))
    assert out.shape == (B, 3, 3)
    # with the module's __init__ (transform.weight=0, bias=I) the output is identity
    assert jnp.allclose(out, eye, atol=1e-5), "identity check failed"
    assert jnp.allclose(out_tiled, eye, atol=1e-5), "tiled identity check failed"
    assert jnp.allclose(out_chunk, eye, atol=1e-5), "chunked identity check failed"

    # non-degenerate check of the full hot path: perturb the final weight
    params2 = dict(params)
    params2["w6"] = 0.01 * jax.random.normal(kw, (256, 9), jnp.float32)
    prepared2 = prepare_params(params2)
    out2 = jax.block_until_ready(
        transform_net_forward_kmajor(x_kmaj, prepared2, tile_n=8, n_chunks=2))
    ref_m = ref_forward_mixed(x, prepared2)
    ref_f = ref_forward_f32(x, params2)
    assert jnp.allclose(out2, ref_m, atol=2e-3, rtol=2e-3), "mixed-precision ref check failed"
    assert jnp.allclose(out2, ref_f, atol=5e-2, rtol=5e-2), "f32 ref check failed"

    print("KERNEL_OK")
</pallas_src>

<mosaic_0001>
module attributes {stable_mosaic.version = 11 : i64} {
  func.func @_transform_net_kernel(%arg0: i32, %arg1: i32, %arg2: i32, %arg3: memref<1x8x16x6xbf16, #tpu.memory_space<vmem>>, %arg4: memref<6x64xbf16, #tpu.memory_space<vmem>>, %arg5: memref<1x64xf32, #tpu.memory_space<vmem>>, %arg6: memref<64x128xbf16, #tpu.memory_space<vmem>>, %arg7: memref<1x128xf32, #tpu.memory_space<vmem>>, %arg8: memref<128x1024xbf16, #tpu.memory_space<vmem>>, %arg9: memref<1x1024xf32, #tpu.memory_space<vmem>>, %arg10: memref<1x1x8x1024xf32, #tpu.memory_space<vmem>>) attributes {dimension_semantics = [#tpu.dimension_semantics<parallel>, #tpu.dimension_semantics<parallel>, #tpu.dimension_semantics<arbitrary>], iteration_bounds = array<i64: 2, 1, 1>, scalar_prefetch = 0 : i64, scratch_operands = 0 : i64, tpu.core_type = #tpu.core_type<tc>, window_params = [{transform_indices = @transform_0, window_bounds = array<i64: 1, 8, 16, 6>}, {pipeline_mode = #tpu.pipeline_mode<synchronous>, transform_indices = @transform_1, window_bounds = array<i64: 6, 64>}, {pipeline_mode = #tpu.pipeline_mode<synchronous>, transform_indices = @transform_2, window_bounds = array<i64: 1, 64>}, {pipeline_mode = #tpu.pipeline_mode<synchronous>, transform_indices = @transform_3, window_bounds = array<i64: 64, 128>}, {pipeline_mode = #tpu.pipeline_mode<synchronous>, transform_indices = @transform_4, window_bounds = array<i64: 1, 128>}, {pipeline_mode = #tpu.pipeline_mode<synchronous>, transform_indices = @transform_5, window_bounds = array<i64: 128, 1024>}, {pipeline_mode = #tpu.pipeline_mode<synchronous>, transform_indices = @transform_6, window_bounds = array<i64: 1, 1024>}, {transform_indices = @transform_7, window_bounds = array<i64: 1, 1, 8, 1024>}]} {
    %c0 = arith.constant 0 : index
    %c0_0 = arith.constant 0 : index
    %c0_1 = arith.constant 0 : index
    %c0_2 = arith.constant 0 : index
    %0 = vector.load %arg3[%c0, %c0_0, %c0_1, %c0_2] : memref<1x8x16x6xbf16, #tpu.memory_space<vmem>>, vector<1x8x16x6xbf16>
    %1 = vector.shape_cast %0 : vector<1x8x16x6xbf16> to vector<8x16x6xbf16>
    %2 = vector.shape_cast %1 : vector<8x16x6xbf16> to vector<128x6xbf16>
    %c0_3 = arith.constant 0 : index
    %c0_4 = arith.constant 0 : index
    %3 = vector.load %arg4[%c0_3, %c0_4] : memref<6x64xbf16, #tpu.memory_space<vmem>>, vector<6x64xbf16>
    %cst = arith.constant dense<0.000000e+00> : vector<128x64xf32>
    %4 = tpu.matmul %2, %3, %cst {dimension_numbers = #tpu.dot_dimension_numbers<[1], [0], [0], [1], [0, 0, 1, 1], [], []>} : vector<128x6xbf16>, vector<6x64xbf16>, vector<128x64xf32> -> vector<128x64xf32>
    %c0_5 = arith.constant 0 : index
    %c0_6 = arith.constant 0 : index
    %5 = vector.load %arg5[%c0_5, %c0_6] : memref<1x64xf32, #tpu.memory_space<vmem>>, vector<1x64xf32>
    %6 = vector.broadcast %5 : vector<1x64xf32> to vector<128x64xf32>
    %7 = arith.addf %4, %6 : vector<128x64xf32>
    %cst_7 = arith.constant 0.000000e+00 : f32
    %8 = vector.broadcast %cst_7 : f32 to vector<128x64xf32>
    %9 = arith.cmpf oge, %7, %8 : vector<128x64xf32>
    %cst_8 = arith.constant 2.000000e-01 : f32
    %10 = vector.broadcast %cst_8 : f32 to vector<128x64xf32>
    %11 = arith.mulf %10, %7 : vector<128x64xf32>
    %12 = arith.select %9, %7, %11 : vector<128x64xi1>, vector<128x64xf32>
    %13 = arith.truncf %12 : vector<128x64xf32> to vector<128x64xbf16>
    %c0_9 = arith.constant 0 : index
    %c0_10 = arith.constant 0 : index
    %14 = vector.load %arg6[%c0_9, %c0_10] : memref<64x128xbf16, #tpu.memory_space<vmem>>, vector<64x128xbf16>
    %cst_11 = arith.constant dense<0.000000e+00> : vector<128x128xf32>
    %15 = tpu.matmul %13, %14, %cst_11 {dimension_numbers = #tpu.dot_dimension_numbers<[1], [0], [0], [1], [0, 0, 1, 1], [], []>} : vector<128x64xbf16>, vector<64x128xbf16>, vector<128x128xf32> -> vector<128x128xf32>
    %c0_12 = arith.constant 0 : index
    %c0_13 = arith.constant 0 : index
    %16 = vector.load %arg7[%c0_12, %c0_13] : memref<1x128xf32, #tpu.memory_space<vmem>>, vector<1x128xf32>
    %17 = vector.broadcast %16 : vector<1x128xf32> to vector<128x128xf32>
    %18 = arith.addf %15, %17 : vector<128x128xf32>
    %cst_14 = arith.constant 0.000000e+00 : f32
    %19 = vector.broadcast %cst_14 : f32 to vector<128x128xf32>
    %20 = arith.cmpf oge, %18, %19 : vector<128x128xf32>
    %cst_15 = arith.constant 2.000000e-01 : f32
    %21 = vector.broadcast %cst_15 : f32 to vector<128x128xf32>
    %22 = arith.mulf %21, %18 : vector<128x128xf32>
    %23 = arith.select %20, %18, %22 : vector<128x128xi1>, vector<128x128xf32>
    %24 = vector.shape_cast %23 : vector<128x128xf32> to vector<8x16x128xf32>
    %cst_16 = arith.constant dense<0xFF800000> : vector<16x128xf32>
    %25 = vector.multi_reduction <maximumf>, %24, %cst_16 [0] : vector<8x16x128xf32> to vector<16x128xf32>
    %26 = arith.truncf %25 : vector<16x128xf32> to vector<16x128xbf16>
    %c0_17 = arith.constant 0 : index
    %c0_18 = arith.constant 0 : index
    %27 = vector.load %arg8[%c0_17, %c0_18] : memref<128x1024xbf16, #tpu.memory_space<vmem>>, vector<128x1024xbf16>
    %cst_19 = arith.constant dense<0.000000e+00> : vector<16x1024xf32>
    %28 = tpu.matmul %26, %27, %cst_19 {dimension_numbers = #tpu.dot_dimension_numbers<[1], [0], [0], [1], [0, 0, 1, 1], [], []>} : vector<16x128xbf16>, vector<128x1024xbf16>, vector<16x1024xf32> -> vector<16x1024xf32>
    %c0_20 = arith.constant 0 : index
    %c0_21 = arith.constant 0 : index
    %29 = vector.load %arg9[%c0_20, %c0_21] : memref<1x1024xf32, #tpu.memory_space<vmem>>, vector<1x1024xf32>
    %30 = vector.broadcast %29 : vector<1x1024xf32> to vector<16x1024xf32>
    %31 = arith.addf %28, %30 : vector<16x1024xf32>
    %cst_22 = arith.constant 0.000000e+00 : f32
    %32 = vector.broadcast %cst_22 : f32 to vector<16x1024xf32>
    %33 = arith.cmpf oge, %31, %32 : vector<16x1024xf32>
    %cst_23 = arith.constant 2.000000e-01 : f32
    %34 = vector.broadcast %cst_23 : f32 to vector<16x1024xf32>
    %35 = arith.mulf %34, %31 : vector<16x1024xf32>
    %36 = arith.select %33, %31, %35 : vector<16x1024xi1>, vector<16x1024xf32>
    %37 = vector.shape_cast %36 : vector<16x1024xf32> to vector<2x8x1024xf32>
    %cst_24 = arith.constant dense<0xFF800000> : vector<8x1024xf32>
    %38 = vector.multi_reduction <maximumf>, %37, %cst_24 [0] : vector<2x8x1024xf32> to vector<8x1024xf32>
    %c0_i32 = arith.constant 0 : i32
    %39 = arith.cmpi eq, %arg2, %c0_i32 : i32
    %40 = arith.extui %39 : i1 to i32
    %c0_i32_25 = arith.constant 0 : i32
    %41 = arith.cmpi ne, %40, %c0_i32_25 : i32
    scf.if %41 {
      %cst_34 = arith.constant 0xFF800000 : f32
      %46 = vector.broadcast %cst_34 : f32 to vector<1x1x8x1024xf32>
      %c0_35 = arith.constant 0 : index
      %c0_36 = arith.constant 0 : index
      %c0_37 = arith.constant 0 : index
      %c0_38 = arith.constant 0 : index
      %47 = vector.load %arg10[%c0_35, %c0_36, %c0_37, %c0_38] : memref<1x1x8x1024xf32, #tpu.memory_space<vmem>>, vector<1x1x8x1024xf32>
      tpu.vector_store %arg10[%c0_35, %c0_36, %c0_37, %c0_38], %46 {strides = array<i32>} : memref<1x1x8x1024xf32, #tpu.memory_space<vmem>>, vector<1x1x8x1024xf32>,
    } else {
    }
    %c0_26 = arith.constant 0 : index
    %c0_27 = arith.constant 0 : index
    %c0_28 = arith.constant 0 : index
    %c0_29 = arith.constant 0 : index
    %42 = vector.load %arg10[%c0_26, %c0_27, %c0_28, %c0_29] : memref<1x1x8x1024xf32, #tpu.memory_space<vmem>>, vector<1x1x8x1024xf32>
    %43 = vector.shape_cast %38 : vector<8x1024xf32> to vector<1x1x8x1024xf32>
    %44 = arith.maximumf %42, %43 : vector<1x1x8x1024xf32>
    %c0_30 = arith.constant 0 : index
    %c0_31 = arith.constant 0 : index
    %c0_32 = arith.constant 0 : index
    %c0_33 = arith.constant 0 : index
    %45 = vector.load %arg10[%c0_30, %c0_31, %c0_32, %c0_33] : memref<1x1x8x1024xf32, #tpu.memory_space<vmem>>, vector<1x1x8x1024xf32>
    tpu.vector_store %arg10[%c0_30, %c0_31, %c0_32, %c0_33], %44 {strides = array<i32>} : memref<1x1x8x1024xf32, #tpu.memory_space<vmem>>, vector<1x1x8x1024xf32>,
    return
  }
  func.func @transform_0(%arg0: i32, %arg1: i32, %arg2: i32) -> (i32, i32, i32, i32) {
    %c1_i32 = arith.constant 1 : i32
    %0 = arith.muli %arg1, %c1_i32 : i32
    %1 = arith.addi %0, %arg2 : i32
    %c0_i32 = arith.constant 0 : i32
    %c0_i32_0 = arith.constant 0 : i32
    %c0_i32_1 = arith.constant 0 : i32
    return %arg0, %c0_i32, %1, %c0_i32_0 : i32, i32, i32, i32
  }
  func.func @transform_1(%arg0: i32, %arg1: i32, %arg2: i32) -> (i32, i32) {
    %c0_i32 = arith.constant 0 : i32
    %c0_i32_0 = arith.constant 0 : i32
    %c0_i32_1 = arith.constant 0 : i32
    return %c0_i32, %c0_i32_0 : i32, i32
  }
  func.func @transform_2(%arg0: i32, %arg1: i32, %arg2: i32) -> (i32, i32) {
    %c0_i32 = arith.constant 0 : i32
    %c0_i32_0 = arith.constant 0 : i32
    %c0_i32_1 = arith.constant 0 : i32
    return %c0_i32, %c0_i32_0 : i32, i32
  }
  func.func @transform_3(%arg0: i32, %arg1: i32, %arg2: i32) -> (i32, i32) {
    %c0_i32 = arith.constant 0 : i32
    %c0_i32_0 = arith.constant 0 : i32
    %c0_i32_1 = arith.constant 0 : i32
    return %c0_i32, %c0_i32_0 : i32, i32
  }
  func.func @transform_4(%arg0: i32, %arg1: i32, %arg2: i32) -> (i32, i32) {
    %c0_i32 = arith.constant 0 : i32
    %c0_i32_0 = arith.constant 0 : i32
    %c0_i32_1 = arith.constant 0 : i32
    return %c0_i32, %c0_i32_0 : i32, i32
  }
  func.func @transform_5(%arg0: i32, %arg1: i32, %arg2: i32) -> (i32, i32) {
    %c0_i32 = arith.constant 0 : i32
    %c0_i32_0 = arith.constant 0 : i32
    %c0_i32_1 = arith.constant 0 : i32
    return %c0_i32, %c0_i32_0 : i32, i32
  }
  func.func @transform_6(%arg0: i32, %arg1: i32, %arg2: i32) -> (i32, i32) {
    %c0_i32 = arith.constant 0 : i32
    %c0_i32_0 = arith.constant 0 : i32
    %c0_i32_1 = arith.constant 0 : i32
    return %c0_i32, %c0_i32_0 : i32, i32
  }
  func.func @transform_7(%arg0: i32, %arg1: i32, %arg2: i32) -> (i32, i32, i32, i32) {
    %c0_i32 = arith.constant 0 : i32
    %c0_i32_0 = arith.constant 0 : i32
    %c0_i32_1 = arith.constant 0 : i32
    return %arg0, %arg1, %c0_i32, %c0_i32_0 : i32, i32, i32, i32
  }
}

</mosaic_0001>

<bundles_post_ra>
// kernel: tpu_custom_call.1
= control target key start
LH: loop header
LB: loop body
LE: loop exit
PB: predicated region body
PF: predicated region fallthrough
CT: control target
= control target key end

     0   :  { %12 = vsyncpa [#allocation3], 0  ;;  %s2317_s0 = inlined_call_operand.vmem [shape: bf16[2,8,16,6], index: 0, kind: input, shape index: {}]   ;;  %s2318_s1 = inlined_call_operand.vmem [shape: bf16[6,64], index: 1, kind: input, shape index: {}]   ;;  %s2319_s2 = inlined_call_operand.vmem [shape: f32[1,64], index: 2, kind: input, shape index: {}]   ;;  %s2320_s3 = inlined_call_operand.vmem [shape: bf16[64,128], index: 3, kind: input, shape index: {}]   ;;  %s2321_s4 = inlined_call_operand.vmem [shape: f32[1,128], index: 4, kind: input, shape index: {}]   ;;  %s2322_s5 = inlined_call_operand.hbm [shape: bf16[128,1024], index: 5, kind: input, shape index: {}]   ;;  %s2323_s6 = inlined_call_operand.vmem [shape: f32[1,1024], index: 6, kind: input, shape index: {}]   ;;  %s2324_s7 = inlined_call_operand.hbm [shape: f32[2,1,8,1024], index: 7, kind: output, shape index: {}]  }
   0x1   :  { %13 = vsyncpa [#allocation4], 0 }
   0x2   :  { %15 = vsyncpa [#allocation4 + $0x1], 0  ;;  %s2019_s24 = smov 0   ;;  %s2021_s25 = smov 0  }
   0x3   :  { %s2023_s26 = smov 0   ;;  %s2025_s27 = smov 0  }
   0x4   :  { %s2027_s28 = smov 0   ;;  %s2029_s29 = smov 0  }
   0x5 LB: > { %s1605_s30 = sadd.s32 4294967295, %s1972_s29   ;;  %s1606_s8 = sadd.s32 4294967294, %s1972_s29   ;;  %s1972_s29 = sphi %s2029_s29, %s21_s29   ;;  %s1968_s28 = sphi %s2027_s28, %s2342_s28   ;;  %s1964_s27 = sphi %s2025_s27, %s2341_s27   ;;  %s1960_s26 = sphi %s2023_s26, %s2340_s26   ;;  %s1956_s25 = sphi %s2021_s25, %s2339_s25   ;;  %s1952_s24 = sphi %s2019_s24, %s2338_s24  }
   0x6   : > { %s40_s9 = sadd.s32 1, %s1968_s28  ;;  %s205_s10 = sadd.s32 1, %s1960_s26 }
   0x7   : > { %p42_p0 = scmp.ge.s32.totalorder %s40_s9, 2  ;;  %p215_p1 = scmp.ne.s32.totalorder %s1960_s26, %s1956_s25 }
   0x8   : > { %p216_p2 = scmp.eq.s32.totalorder %s1605_s30, 1  ;;  %p221_p3 = scmp.ne.s32.totalorder %s1956_s25, %s1952_s24 }
   0x9   : > { %s2344_s9 = smov (%p42_p0, %s40_s9), 0  ;;  %p222_p5 = scmp.eq.s32.totalorder %s1606_s8, 1 }
   0xa   : > { %p2059_p4 = por %p216_p2, %p215_p1  ;;  %s200_s12 = ssub.s32 %s1968_s28, %s2344_s9 }
   0xb   : > { %p1607_p6 = scmp.ge.s32.totalorder %s1972_s29, 1  ;;  %p203_p7 = scmp.eq.s32.totalorder %s200_s12, 0 }
   0xc   : > { %s2329_s11 = scalar_select %p2059_p4, 1, 0 }
   0xd   : > { %p2066_p8 = por %p222_p5, %p221_p3  ;;  %p229_p9 = scmp.lt.s32.totalorder %s1972_s29, 3 }
   0xe   : > { %s2072_s14 = scalar_select %p203_p7, %s1960_s26, %s205_s10  }
   0xf   : > { %s2330_s13 = scalar_select %p2066_p8, 1, 0 }
  0x10   : > { %p2074_p10 = pnand %p1607_p6, %p229_p9  ;;  %p2078_p11 = scmp.eq.s32.totalorder %s1605_s30, 0 }
  0x11   : > { %s1974_s17 = smov [#allocation2]   ;;  %s1862_s22 = scalar_lea.hbm %s2322_s5, 8192 }
  0x12   : > { %s2331_s15 = scalar_select %p2074_p10, 1, 0 }
  0x13   : > { %s2332_s16 = scalar_select %p2078_p11, 1, 0 }
  0x14   : > { %p1786_p12 = pneg %p2074_p10  ;;  %s253_s18 = sshll.u32 %s1974_s17, 4  ;;  %s254_s18 = int_to_ptr.vmem [resolvable:$true] %s253_s18 }
  0x15   : > { %p1863_p0 = scmp.ne.s32.totalorder %s2322_s5, %s1862_s22  ;;  %p1869_p5 = scmp.lt.u32.totalorder %s1862_s22, %s2322_s5 }
  0x16   : > { %p2086_p13 = pnand %p2078_p11, %p1786_p12 }
  0x18   : > { %p1864_p1 = pneg %p2086_p13 }
  0x1a   : > { %p1865_p2 = pnand %p1864_p1, %p1863_p0 }
  0x1c   : > { %p1866_p3 = pneg %p1865_p2 }
  0x1e   : > { %p1871_p6 = pnand %p1869_p5, %p1866_p3 }
  0x20   : > { %1874 = shalt.err (!%p1871_p6)
}
  0x21   : > { %s1875_s12 = scalar_lea.vmem %s254_s18, 8192  ;;  %p1883_p8 = scmp.lt.s32.totalorder %s254_s18, %s254_s18 }
  0x22   : > { %p1876_p7 = scmp.ne.s32.totalorder %s254_s18, %s1875_s12  ;;  %p1884_p4 = scmp.lt.s32.totalorder %s1875_s12, %s1875_s12 }
  0x24   : > { %p1878_p9 = pnand %p1876_p7, %p1864_p1  ;;  %p1885_p11 = por %p1884_p4, %p1883_p8 }
  0x26   : > { %p1879_p12 = pneg %p1878_p9 }
  0x28   : > { %p1886_p10 = pnand %p1885_p11, %p1879_p12 }
  0x2a   : > { %1889 = shalt.err (!%p1886_p10)
}
  0x2b   : > { %s1975_s17 = smov 512   ;;  %s1976_s20 = smov 32  }
  0x2c   : > { %1789 = dma.hbm_to_vmem [thread:$0]  (!%p2086_p13), %s2322_s5, 8192, %s254_s18, [#allocation3], %s1975_s17, %s1975_s17, %s1976_s20  }
  0x2d   : > { %p2334_p0 = scmp.ne.s32.totalorder %s2331_s15, 0 }
  0x2e   : > { %p2335_p2 = scmp.ne.s32.totalorder (!%p2334_p0), %s2332_s16, 0 }
  0x2f   : > { %287 = sbr.rel (%p2334_p0) target bundleno = 806 (0x326), region = 48 }
  0x36   : > { %1943 = dma.done.wait (%p2335_p2), [#allocation3], 8192  }
  0x37   : > { %1945 = vsyncadd (%p2335_p2), [#allocation3], 4294959104  ;;  %p326_p4 = scmp.lt.s32.totalorder %s1964_s27, 1  ;;  %vm426_vm0 = vcmask 1042432   ;;  %vm401_vm1 = vcmask 48128   ;;  %v1858_v7 = vld [vmem:[%s2320_s3] sm:$0xff]  }
  0x38   : > { %v353_v0 = vld [vmem:[%s2318_s1] sm:$0x7]  ;;  %1755 = vmatprep.subr.bf16.mxu1 %v1858_v7  ;;  %v1859_v11 = vld [vmem:[%s2320_s3 + $0x8] sm:$0xff]   ;;  %v1860_v12 = vld [vmem:[%s2320_s3 + $0x10] sm:$0xff]   ;;  %vm622_vm6 = vcmask 523264   ;;  %s321_s12 = sand.u32 1, %s1956_s25  }
  0x39   : > { %s327_s22 = scalar_select %p326_p4, %s1964_s27, 1  ;;  %1779 = vmatprep.subr.msk.bf16.mxu0 %vm426_vm0, %v353_v0  ;;  %v428_v1 = vsel %vm426_vm0, %v353_v0, 0  ;;  %1756 = vmatpush3.bf16.msra.mxu1 %v1858_v7  ;;  %v1861_v13 = vld [vmem:[%s2320_s3 + $0x18] sm:$0xff]   ;;  %v2143_v14 = vld [vmem:[%s2319_s2] ss:$0 sm:$0xff] }
  0x3a   : > { %1738 = vmatpush3.bf16.msra.mxu0 %v428_v1  ;;  %1757 = vmatprep.subr.bf16.mxu1 %v1859_v11  ;;  %s1612_s17 = sshll.u32 %s321_s12, 6  ;;  %s1715_s21 = sshll.u32 %s1964_s27, 10 }
  0x3b   : > { %s1714_s30 = sshll.u32 %s327_s22, 6  ;;  %s2243_s20 = scalar_lea.vmem [#allocation5], %s1612_s17 }
  0x3c   : > { %s333_s10 = scalar_lea.vmem %s2317_s0, %s1714_s30  ;;  %s1514_s23 = sshll.u32 %s2243_s20, 4  ;;  %s2266_s23 = int_to_ptr.vmem [resolvable:$true] %s1514_s23 }
  0x3d   : > { %v1850_v2 = vld [vmem:[%s333_s10] sm:$0xff]   ;;  %v1851_v3 = vld [vmem:[%s333_s10 + $0x8] sm:$0xff]   ;;  %v1852_v4 = vld [vmem:[%s333_s10 + $0x10] sm:$0xff]   ;;  %1758 = vmatpush3.bf16.msra.mxu1 %v1859_v11  ;;  %s2264_s19 = scalar_lea.hbm %s2324_s7, %s1715_s21  ;;  %s1498_s8 = scalar_lea.sflag [#allocation4], %s321_s12 }
  0x3e   : > { %1739 = vmatprep.mubr.msk.bf16.mxu0 %vm401_vm1, %v1850_v2  ;;  %v1853_v5 = vld [vmem:[%s333_s10 + $0x18] sm:$0xff]   ;;  %v1854_v6 = vld [vmem:[%s333_s10 + $0x20] sm:$0xff]   ;;  %v1855_v8 = vld [vmem:[%s333_s10 + $0x28] sm:$0xff]   ;;  %1759 = vmatprep.subr.bf16.mxu1 %v1860_v12  ;;  %s1890_s27 = scalar_lea.vmem %s2266_s23, 1024  ;;  %p2336_p10 = scmp.ne.s32.totalorder %s2329_s11, 0 }
  0x3f   : > { %1740 = vmatmul.mubr.msk.bf16.vlgmr.msra.gmra.mrb[0].mxu0 %vm401_vm1, %v1851_v3  ;;  %v1856_v9 = vld [vmem:[%s333_s10 + $0x30] sm:$0xff]   ;;  %v1857_v10 = vld [vmem:[%s333_s10 + $0x38] sm:$0xff]   ;;  %p1891_p8 = scmp.ne.s32.totalorder %s2266_s23, %s1890_s27  ;;  %s1978_s10 = smov [#allocation5]  }
  0x40   : > { %1743 = vmatprep.mubr.msk.bf16.mxu0 %vm401_vm1, %v1852_v4  ;;  %s1894_s18 = sshll.u32 %s1978_s10, 4  ;;  %s1895_s18 = int_to_ptr.vmem [resolvable:$false] %s1894_s18 }
  0x41   : > { %1760 = vmatpush3.bf16.msra.mxu1 %v1860_v12  ;;  %p1892_p11 = pnand %p1891_p8, %p2336_p10  ;;  %s1896_s15 = scalar_lea.vmem %s1895_s18, 2048 }
  0x42   : > { %1761 = vmatprep.subr.bf16.mxu1 %v1861_v13  ;;  %p1897_p1 = scmp.lt.s32.totalorder %s2266_s23, %s1895_s18  ;;  %p1898_p3 = scmp.lt.s32.totalorder %s1896_s15, %s1890_s27 }
  0x43   : > { %p1893_p13 = pneg %p1892_p11 }
  0x44   : > { %p1899_p5 = por %p1898_p3, %p1897_p1 }
  0x45   : > { %1762 = vmatpush3.bf16.msra.mxu1 %v1861_v13 }
  0x46   : > { %p1900_p6 = pnand %p1899_p5, %p1893_p13 }
  0x47   : > { %1744 = vmatmul.mubr.msk.bf16.gmra.mrb[4].mxu0 %vm401_vm1, %v1853_v5 }
  0x48   : > { %1747 = vmatprep.mubr.msk.bf16.mxu0 %vm401_vm1, %v1854_v6 }
  0x4f   : > { %1748 = vmatmul.mubr.msk.bf16.gmra.mrb[8].mxu0 %vm401_vm1, %v1855_v8 }
  0x50   : > { %1751 = vmatprep.mubr.msk.bf16.mxu0 %vm401_vm1, %v1856_v9 }
  0x57   : > { %1752 = vmatmul.mubr.msk.bf16.gmra.mrb[12].mxu0 %vm401_vm1, %v1857_v10 }
 0x112   : > { %v1741_v15 = vpop.f32.mrb[0].mxu0 }
 0x113   : > { %v473_v16 = vadd.f32 %v1741_v15, %v2143_v14  ;;  %v464_v17 = vpop.f32.mrb[1].mxu0 }
 0x114   : > { %v465_v18 = vadd.f32 %v2143_v14, %v464_v17  ;;  %v1742_v19 = vpop.f32.mrb[2].mxu0 }
 0x115   : > { %v545_v20 = vmul.f32 0.2, %v473_v16  ;;  %v476_v21 = vadd.f32 %v1742_v19, %v2143_v14  ;;  %v467_v22 = vpop.f32.mrb[3].mxu0  ;;  %vm529_vm2 = vcmp.ge.f32.partialorder %v473_v16, 0.0 }
 0x116   : > { %v543_v23 = vmul.f32 0.2, %v465_v18  ;;  %v468_v24 = vadd.f32 %v2143_v14, %v467_v22  ;;  %vm527_vm4 = vcmp.ge.f32.partialorder %v465_v18, 0.0 }
 0x117   : > { %vm530_vm3 = vcmp.ge.f32.partialorder %v476_v21, 0.0  ;;  %v546_v25 = vmul.f32 0.2, %v476_v21  ;;  %v561_v27 = vsel %vm529_vm2, %v473_v16, %v545_v20 }
 0x118   : > { %v544_v26 = vmul.f32 0.2, %v468_v24  ;;  %vm528_vm5 = vcmp.ge.f32.partialorder %v468_v24, 0.0  ;;  %v559_v31 = vsel %vm527_vm4, %v465_v18, %v543_v23 }
 0x119   : > { %v562_v28 = vsel %vm530_vm3, %v476_v21, %v546_v25  ;;  %v811_v25 = vld [vmem:[#allocation2 + $0x20] sm:$0xff] }
 0x11a   : > { %v576_v29 = vpack.c.bf16 %v562_v28, %v561_v27  ;;  %v1745_v30 = vpop.f32.mrb[4].mxu0  ;;  %v560_v32 = vsel %vm528_vm5, %v468_v24, %v544_v26  ;;  %v807_v24 = vld [vmem:[#allocation2] sm:$0xff]  ;;  %v812_v27 = vld [vmem:[#allocation2 + $0x28] sm:$0xff] }
 0x11b   : > { %v489_v33 = vadd.f32 %v1745_v30, %v2143_v14  ;;  %v480_v34 = vpop.f32.mrb[5].mxu0  ;;  %v575_v35 = vpack.c.bf16 %v560_v32, %v559_v31  ;;  %v1646_v26 = vcombine.high %v807_v24, %v811_v25  ;;  %v1645_v28 = vcombine.low %v807_v24, %v811_v25  ;;  %v815_v31 = vld [vmem:[#allocation2 + $0x40] sm:$0xff]  ;;  %v2169_v24 = vld [vmem:[#allocation2 + $0x10] sm:$0xff] }
 0x11c   : > { %v481_v36 = vadd.f32 %v2143_v14, %v480_v34  ;;  %v1746_v37 = vpop.f32.mrb[6].mxu0  ;;  %v819_v32 = vld [vmem:[#allocation2 + $0x60] sm:$0xff]  ;;  %v2171_v25 = vld [vmem:[#allocation2 + $0x30] sm:$0xff] }
 0x11d   : > { %v549_v38 = vmul.f32 0.2, %v489_v33  ;;  %v492_v39 = vadd.f32 %v1746_v37, %v2143_v14  ;;  %v483_v40 = vpop.f32.mrb[7].mxu0  ;;  %1763 = vmatprep.mubr.msk.bf16.mxu1 %vm622_vm6, %v575_v35  ;;  %vm533_vm7 = vcmp.ge.f32.partialorder %v489_v33, 0.0  ;;  %1233 = vmatprep.subr.bf16.mxu0 %v1646_v26  ;;  %v1654_v34 = vcombine.high %v815_v31, %v819_v32  ;;  %v820_v35 = vld [vmem:[#allocation2 + $0x68] sm:$0xff] }
 0x11e   : > { %v547_v41 = vmul.f32 0.2, %v481_v36  ;;  %v484_v42 = vadd.f32 %v2143_v14, %v483_v40  ;;  %1764 = vmatmul.mubr.msk.bf16.vlgmr.msra.gmra.mrb[0].mxu1 %vm622_vm6, %v576_v29  ;;  %vm531_vm8 = vcmp.ge.f32.partialorder %v481_v36, 0.0  ;;  %1234 = vmatpush1.bf16.msra.mxu0 %v1645_v28  ;;  %v827_v40 = vld [vmem:[#allocation2 + $0xa0] sm:$0xff]  ;;  %v1650_v26 = vcombine.high %v2169_v24, %v2171_v25 }
 0x11f   : > { %vm534_vm9 = vcmp.ge.f32.partialorder %v492_v39, 0.0  ;;  %v550_v43 = vmul.f32 0.2, %v492_v39  ;;  %v565_v45 = vsel %vm533_vm7, %v489_v33, %v549_v38  ;;  %v816_v33 = vld [vmem:[#allocation2 + $0x48] sm:$0xff]  ;;  %1235 = vmatprep.subr.bf16.mxu0 %v1654_v34  ;;  %v1649_v28 = vcombine.low %v2169_v24, %v2171_v25 }
 0x120   : > { %vm532_vm10 = vcmp.ge.f32.partialorder %v484_v42, 0.0  ;;  %v548_v44 = vmul.f32 0.2, %v484_v42  ;;  %v563_v47 = vsel %vm531_vm8, %v481_v36, %v547_v41  ;;  %v1653_v36 = vcombine.low %v815_v31, %v819_v32  ;;  %v824_v41 = vld [vmem:[#allocation2 + $0x88] sm:$0xff]  ;;  %v2190_v32 = vld [vmem:[%s2321_s4] ss:$0 sm:$0xff] }
 0x121   : > { %v566_v46 = vsel %vm534_vm9, %v492_v39, %v550_v43  ;;  %v1655_v37 = vcombine.low %v816_v33, %v820_v35  ;;  %v1656_v38 = vcombine.high %v816_v33, %v820_v35  ;;  %v823_v39 = vld [vmem:[#allocation2 + $0x80] sm:$0xff]  ;;  %v828_v43 = vld [vmem:[#allocation2 + $0xa8] sm:$0xff]  ;;  %v1977_v31 = vmov 0  }
 0x122   : > { %v578_v48 = vpack.c.bf16 %v566_v46, %v565_v45  ;;  %v564_v49 = vsel %vm532_vm10, %v484_v42, %v548_v44  ;;  %v1749_v50 = vpop.f32.mrb[8].mxu0  ;;  %1236 = vmatpush1.bf16.msra.mxu0 %v1653_v36  ;;  %v1662_v42 = vcombine.high %v823_v39, %v827_v40  ;;  %v1661_v44 = vcombine.low %v823_v39, %v827_v40 }
 0x123   : > { %v577_v51 = vpack.c.bf16 %v564_v49, %v563_v47  ;;  %v505_v52 = vadd.f32 %v1749_v50, %v2143_v14  ;;  %v496_v53 = vpop.f32.mrb[9].mxu0  ;;  %v1663_v45 = vcombine.low %v824_v41, %v828_v43  ;;  %v1664_v46 = vcombine.high %v824_v41, %v828_v43  ;;  %v831_v47 = vld [vmem:[#allocation2 + $0xc0] sm:$0xff]  ;;  %v832_v49 = vld [vmem:[#allocation2 + $0xc8] sm:$0xff]  ;;  %1265 = vmatprep.mubr.bf16.mxu0 %v1977_v31 }
 0x124   : > { %v497_v54 = vadd.f32 %v2143_v14, %v496_v53  ;;  %v1750_v55 = vpop.f32.mrb[10].mxu0  ;;  %1237 = vmatprep.subr.bf16.mxu0 %v1662_v42 }
 0x125   : > { %v553_v56 = vmul.f32 0.2, %v505_v52  ;;  %v508_v57 = vadd.f32 %v1750_v55, %v2143_v14  ;;  %v499_v58 = vpop.f32.mrb[11].mxu0  ;;  %1767 = vmatprep.mubr.msk.bf16.mxu1 %vm622_vm6, %v577_v51  ;;  %vm537_vm11 = vcmp.ge.f32.partialorder %v505_v52, 0.0  ;;  %v836_v51 = vld [vmem:[#allocation2 + $0xe8] sm:$0xff]  ;;  %v839_v55 = vld [vmem:[#allocation2 + $0x100] sm:$0xff] }
 0x126   : > { %v551_v59 = vmul.f32 0.2, %v497_v54  ;;  %v500_v60 = vadd.f32 %v2143_v14, %v499_v58  ;;  %1768 = vmatmul.mubr.msk.bf16.gmra.mrb[4].mxu1 %vm622_vm6, %v578_v48  ;;  %vm535_vm12 = vcmp.ge.f32.partialorder %v497_v54, 0.0  ;;  %1238 = vmatpush1.bf16.msra.mxu0 %v1661_v44  ;;  %v835_v48 = vld [vmem:[#allocation2 + $0xe0] sm:$0xff]  ;;  %v1671_v53 = vcombine.low %v832_v49, %v836_v51 }
 0x127   : > { %vm538_vm13 = vcmp.ge.f32.partialorder %v508_v57, 0.0  ;;  %v554_v61 = vmul.f32 0.2, %v508_v57  ;;  %v569_v63 = vsel %vm537_vm11, %v505_v52, %v553_v56  ;;  %v1670_v50 = vcombine.high %v831_v47, %v835_v48  ;;  %v843_v56 = vld [vmem:[#allocation2 + $0x120] sm:$0xff] }
 0x128   : > { %vm536_vm14 = vcmp.ge.f32.partialorder %v500_v60, 0.0  ;;  %v552_v62 = vmul.f32 0.2, %v500_v60  ;;  %v567_v1 = vsel %vm535_vm12, %v497_v54, %v551_v59  ;;  %v1669_v52 = vcombine.low %v831_v47, %v835_v48  ;;  %v844_v59 = vld [vmem:[#allocation2 + $0x128] sm:$0xff] }
 0x129   : > { %v570_v0 = vsel %vm538_vm13, %v508_v57, %v554_v61  ;;  %v1672_v54 = vcombine.high %v832_v49, %v836_v51  ;;  %1239 = vmatprep.subr.bf16.mxu0 %v1670_v50  ;;  %v840_v57 = vld [vmem:[#allocation2 + $0x108] sm:$0xff]  ;;  %v1678_v58 = vcombine.high %v839_v55, %v843_v56 }
 0x12a   : > { %v580_v2 = vpack.c.bf16 %v570_v0, %v569_v63  ;;  %v568_v3 = vsel %vm536_vm14, %v500_v60, %v552_v62  ;;  %v1753_v4 = vpop.f32.mrb[12].mxu0  ;;  %1240 = vmatpush1.bf16.msra.mxu0 %v1669_v52  ;;  %v1677_v60 = vcombine.low %v839_v55, %v843_v56  ;;  %v1679_v61 = vcombine.low %v840_v57, %v844_v59  ;;  %v847_v63 = vld [vmem:[#allocation2 + $0x140] sm:$0xff] }
 0x12b   : > { %v579_v5 = vpack.c.bf16 %v568_v3, %v567_v1  ;;  %v521_v6 = vadd.f32 %v1753_v4, %v2143_v14  ;;  %v512_v7 = vpop.f32.mrb[13].mxu0  ;;  %v1680_v62 = vcombine.high %v840_v57, %v844_v59  ;;  %1241 = vmatprep.subr.bf16.mxu0 %v1678_v58  ;;  %v851_v0 = vld [vmem:[#allocation2 + $0x160] sm:$0xff]  ;;  %v848_v1 = vld [vmem:[#allocation2 + $0x148] sm:$0xff] }
 0x12c   : > { %v513_v8 = vadd.f32 %v2143_v14, %v512_v7  ;;  %v1754_v9 = vpop.f32.mrb[14].mxu0  ;;  %v852_v3 = vld [vmem:[#allocation2 + $0x168] sm:$0xff]  ;;  %v1685_v4 = vcombine.low %v847_v63, %v851_v0  ;;  %v855_v7 = vld [vmem:[#allocation2 + $0x180] sm:$0xff] }
 0x12d   : > { %v557_v10 = vmul.f32 0.2, %v521_v6  ;;  %v524_v11 = vadd.f32 %v1754_v9, %v2143_v14  ;;  %v515_v12 = vpop.f32.mrb[15].mxu0  ;;  %1771 = vmatprep.mubr.msk.bf16.mxu1 %vm622_vm6, %v579_v5  ;;  %vm541_vm15 = vcmp.ge.f32.partialorder %v521_v6, 0.0  ;;  %v1687_v5 = vcombine.low %v848_v1, %v852_v3  ;;  %v856_v9 = vld [vmem:[#allocation2 + $0x188] sm:$0xff] }
 0x12e   : > { %v555_v13 = vmul.f32 0.2, %v513_v8  ;;  %v516_v15 = vadd.f32 %v2143_v14, %v515_v12  ;;  %1772 = vmatmul.mubr.msk.bf16.gmra.mrb[8].mxu1 %vm622_vm6, %v580_v2  ;;  %vm539_vm0 = vcmp.ge.f32.partialorder %v513_v8, 0.0  ;;  %v808_v14 = vld [vmem:[#allocation2 + $0x8] sm:$0xff]  ;;  %1242 = vmatpush1.bf16.msra.mxu0 %v1677_v60  ;;  %v1686_v2 = vcombine.high %v847_v63, %v851_v0 }
 0x12f   : > { %vm542_vm1 = vcmp.ge.f32.partialorder %v524_v11, 0.0  ;;  %v558_v16 = vmul.f32 0.2, %v524_v11  ;;  %v573_v18 = vsel %vm541_vm15, %v521_v6, %v557_v10  ;;  %v1647_v29 = vcombine.low %v808_v14, %v812_v27 }
 0x130   : > { %vm540_vm2 = vcmp.ge.f32.partialorder %v516_v15, 0.0  ;;  %v556_v17 = vmul.f32 0.2, %v516_v15  ;;  %v571_v20 = vsel %vm539_vm0, %v513_v8, %v555_v13  ;;  %v1648_v30 = vcombine.high %v808_v14, %v812_v27  ;;  %1243 = vmatprep.subr.bf16.mxu0 %v1686_v2  ;;  %v859_v8 = vld [vmem:[#allocation2 + $0x1a0] sm:$0xff]  ;;  %v2173_v14 = vld [vmem:[#allocation2 + $0x18] sm:$0xff] }
 0x131   : > { %v574_v19 = vsel %vm542_vm1, %v524_v11, %v558_v16  ;;  %v1688_v6 = vcombine.high %v848_v1, %v852_v3  ;;  %v1694_v10 = vcombine.high %v855_v7, %v859_v8  ;;  %v860_v11 = vld [vmem:[#allocation2 + $0x1a8] sm:$0xff]  ;;  %v1693_v12 = vcombine.low %v855_v7, %v859_v8  ;;  %v863_v16 = vld [vmem:[#allocation2 + $0x1c0] sm:$0xff]  ;;  %v2177_v27 = vld [vmem:[#allocation2 + $0x38] sm:$0xff] }
 0x132   : > { %v582_v21 = vpack.c.bf16 %v574_v19, %v573_v18  ;;  %v572_v22 = vsel %vm540_vm2, %v516_v15, %v556_v17  ;;  %1276 = vmatprep.subr.bf16.mxu1 %v1648_v30  ;;  %1244 = vmatpush1.bf16.msra.mxu0 %v1685_v4  ;;  %v1695_v13 = vcombine.low %v856_v9, %v860_v11  ;;  %v867_v17 = vld [vmem:[#allocation2 + $0x1e0] sm:$0xff]  ;;  %v864_v18 = vld [vmem:[#allocation2 + $0x1c8] sm:$0xff] }
 0x133   : > { %v581_v23 = vpack.c.bf16 %v572_v22, %v571_v20  ;;  %1277 = vmatpush1.bf16.msra.mxu1 %v1647_v29  ;;  %v1696_v15 = vcombine.high %v856_v9, %v860_v11  ;;  %1245 = vmatprep.subr.bf16.mxu0 %v1694_v10  ;;  %v1702_v19 = vcombine.high %v863_v16, %v867_v17  ;;  %v868_v20 = vld [vmem:[#allocation2 + $0x1e8] sm:$0xff] }
 0x134   : > { %1278 = vmatprep.subr.bf16.mxu1 %v1656_v38  ;;  %v1703_v22 = vcombine.low %v864_v18, %v868_v20  ;;  %v1651_v29 = vcombine.low %v2173_v14, %v2177_v27  ;;  %v1652_v30 = vcombine.high %v2173_v14, %v2177_v27 }
 0x135   : > { %1775 = vmatprep.mubr.msk.bf16.mxu1 %vm622_vm6, %v581_v23  ;;  %v1704_v23 = vcombine.high %v864_v18, %v868_v20 }
 0x136   : > { %1776 = vmatmul.mubr.msk.bf16.gmra.mrb[12].mxu1 %vm622_vm6, %v582_v21  ;;  %1246 = vmatpush1.bf16.msra.mxu0 %v1693_v12  ;;  %v1701_v21 = vcombine.low %v863_v16, %v867_v17 }
 0x137   : > { %1279 = vmatpush1.bf16.msra.mxu1 %v1655_v37  ;;  %1247 = vmatprep.subr.bf16.mxu0 %v1702_v19 }
 0x138   : > { %1280 = vmatprep.subr.bf16.mxu1 %v1664_v46  ;;  %1308 = vmatprep.mubr.bf16.mxu1 %v1977_v31 }
 0x13a   : > { %1248 = vmatpush1.bf16.msra.mxu0 %v1701_v21 }
 0x13b   : > { %1281 = vmatpush1.bf16.msra.mxu1 %v1663_v45  ;;  %1319 = vmatprep.subr.bf16.mxu0 %v1650_v26 }
 0x13c   : > { %1282 = vmatprep.subr.bf16.mxu1 %v1672_v54 }
 0x13f   : > { %1283 = vmatpush1.bf16.msra.mxu1 %v1671_v53 }
 0x140   : > { %1284 = vmatprep.subr.bf16.mxu1 %v1680_v62 }
 0x143   : > { %1285 = vmatpush1.bf16.msra.mxu1 %v1679_v61 }
 0x144   : > { %1286 = vmatprep.subr.bf16.mxu1 %v1688_v6 }
 0x147   : > { %1287 = vmatpush1.bf16.msra.mxu1 %v1687_v5 }
 0x148   : > { %1288 = vmatprep.subr.bf16.mxu1 %v1696_v15 }
 0x14b   : > { %1289 = vmatpush1.bf16.msra.mxu1 %v1695_v13 }
 0x14c   : > { %1290 = vmatprep.subr.bf16.mxu1 %v1704_v23 }
 0x14f   : > { %1291 = vmatpush1.bf16.msra.mxu1 %v1703_v22 }
 0x150   : > { %1362 = vmatprep.subr.bf16.mxu1 %v1652_v30 }
 0x1f1   : > { %v1765_v33 = vpop.f32.mrb[0].mxu1 }
 0x1f2   : > { %v681_v34 = vpop.f32.mrb[1].mxu1  ;;  %v690_v35 = vadd.f32 %v1765_v33, %v2190_v32 }
 0x1f3   : > { %v1766_v36 = vpop.f32.mrb[2].mxu1  ;;  %v682_v37 = vadd.f32 %v2190_v32, %v681_v34 }
 0x1f4   : > { %v684_v38 = vpop.f32.mrb[3].mxu1  ;;  %v762_v39 = vmul.f32 0.2, %v690_v35  ;;  %v693_v40 = vadd.f32 %v1766_v36, %v2190_v32  ;;  %vm746_vm3 = vcmp.ge.f32.partialorder %v690_v35, 0.0 }
 0x1f5   : > { %v760_v41 = vmul.f32 0.2, %v682_v37  ;;  %vm744_vm4 = vcmp.ge.f32.partialorder %v682_v37, 0.0  ;;  %v685_v42 = vadd.f32 %v2190_v32, %v684_v38 }
 0x1f6   : > { %v778_v46 = vsel %vm746_vm3, %v690_v35, %v762_v39  ;;  %vm747_vm5 = vcmp.ge.f32.partialorder %v693_v40, 0.0  ;;  %v763_v47 = vmul.f32 0.2, %v693_v40 }
 0x1f7   : > { %v776_v50 = vsel %vm744_vm4, %v682_v37, %v760_v41  ;;  %v761_v54 = vmul.f32 0.2, %v685_v42  ;;  %vm745_vm8 = vcmp.ge.f32.partialorder %v685_v42, 0.0 }
 0x1f8   : > { %v779_v62 = vsel %vm747_vm5, %v693_v40, %v763_v47 }
 0x1f9   : > { %v1769_v43 = vpop.f32.mrb[4].mxu1  ;;  %v777_v1 = vsel %vm745_vm8, %v685_v42, %v761_v54  ;;  %v817_v54 = vld [vmem:[#allocation2 + $0x50] sm:$0xff] }
 0x1fa   : > { %v706_v44 = vadd.f32 %v1769_v43, %v2190_v32  ;;  %v697_v45 = vpop.f32.mrb[5].mxu1 }
 0x1fb   : > { %v698_v48 = vadd.f32 %v2190_v32, %v697_v45  ;;  %v1770_v49 = vpop.f32.mrb[6].mxu1 }
 0x1fc   : > { %vm750_vm6 = vcmp.ge.f32.partialorder %v706_v44, 0.0  ;;  %v766_v51 = vmul.f32 0.2, %v706_v44  ;;  %v709_v52 = vadd.f32 %v1770_v49, %v2190_v32  ;;  %v700_v53 = vpop.f32.mrb[7].mxu1 }
 0x1fd   : > { %vm748_vm7 = vcmp.ge.f32.partialorder %v698_v48, 0.0  ;;  %v764_v55 = vmul.f32 0.2, %v698_v48  ;;  %v701_v56 = vadd.f32 %v2190_v32, %v700_v53 }
 0x1fe   : > { %v782_v57 = vsel %vm750_vm6, %v706_v44, %v766_v51  ;;  %vm751_vm9 = vcmp.ge.f32.partialorder %v709_v52, 0.0  ;;  %v767_v58 = vmul.f32 0.2, %v709_v52 }
 0x1ff   : > { %v793_v59 = vmax.f32 %v778_v46, %v782_v57  ;;  %v780_v60 = vsel %vm748_vm7, %v698_v48, %v764_v55  ;;  %vm749_vm10 = vcmp.ge.f32.partialorder %v701_v56, 0.0  ;;  %v765_v61 = vmul.f32 0.2, %v701_v56  ;;  %v821_v55 = vld [vmem:[#allocation2 + $0x70] sm:$0xff]  ;;  %v822_v57 = vld [vmem:[#allocation2 + $0x78] sm:$0xff] }
 0x200   : > { %v792_v63 = vmax.f32 %v776_v50, %v780_v60  ;;  %v783_v0 = vsel %vm751_vm9, %v709_v52, %v767_v58 }
 0x201   : > { %v800_v2 = vmax.f32 %v779_v62, %v783_v0  ;;  %v781_v3 = vsel %vm749_vm10, %v701_v56, %v765_v61  ;;  %v1773_v4 = vpop.f32.mrb[8].mxu1  ;;  %v818_v56 = vld [vmem:[#allocation2 + $0x58] sm:$0xff]  ;;  %v825_v61 = vld [vmem:[#allocation2 + $0x90] sm:$0xff] }
 0x202   : > { %v799_v5 = vmax.f32 %v777_v1, %v781_v3  ;;  %v722_v6 = vadd.f32 %v1773_v4, %v2190_v32  ;;  %v713_v7 = vpop.f32.mrb[9].mxu1  ;;  %v1660_v60 = vcombine.high %v818_v56, %v822_v57  ;;  %v829_v62 = vld [vmem:[#allocation2 + $0xb0] sm:$0xff]  ;;  %v830_v0 = vld [vmem:[#allocation2 + $0xb8] sm:$0xff]  ;;  %v1657_v1 = vcombine.low %v817_v54, %v821_v55 }
 0x203   : > { %v714_v8 = vadd.f32 %v2190_v32, %v713_v7  ;;  %v1774_v9 = vpop.f32.mrb[10].mxu1  ;;  %v1666_v3 = vcombine.high %v825_v61, %v829_v62  ;;  %v834_v7 = vld [vmem:[#allocation2 + $0xd8] sm:$0xff]  ;;  %v1665_v24 = vcombine.low %v825_v61, %v829_v62 }
 0x204   : > { %vm754_vm11 = vcmp.ge.f32.partialorder %v722_v6, 0.0  ;;  %v770_v10 = vmul.f32 0.2, %v722_v6  ;;  %v725_v11 = vadd.f32 %v1774_v9, %v2190_v32  ;;  %v716_v12 = vpop.f32.mrb[11].mxu1  ;;  %v842_v9 = vld [vmem:[#allocation2 + $0x118] sm:$0xff] }
 0x205   : > { %vm752_vm12 = vcmp.ge.f32.partialorder %v714_v8, 0.0  ;;  %v768_v13 = vmul.f32 0.2, %v714_v8  ;;  %v717_v15 = vadd.f32 %v2190_v32, %v716_v12 }
 0x206   : > { %v786_v16 = vsel %vm754_vm11, %v722_v6, %v770_v10  ;;  %vm755_vm13 = vcmp.ge.f32.partialorder %v725_v11, 0.0  ;;  %v771_v17 = vmul.f32 0.2, %v725_v11  ;;  %v837_v6 = vld [vmem:[#allocation2 + $0xf0] sm:$0xff]  ;;  %v846_v10 = vld [vmem:[#allocation2 + $0x138] sm:$0xff] }
 0x207   : > { %v795_v18 = vmax.f32 %v793_v59, %v786_v16  ;;  %v784_v19 = vsel %vm752_vm12, %v714_v8, %v768_v13  ;;  %vm753_vm14 = vcmp.ge.f32.partialorder %v717_v15, 0.0  ;;  %v769_v20 = vmul.f32 0.2, %v717_v15  ;;  %v838_v8 = vld [vmem:[#allocation2 + $0xf8] sm:$0xff]  ;;  %v853_v16 = vld [vmem:[#allocation2 + $0x170] sm:$0xff] }
 0x208   : > { %v794_v21 = vmax.f32 %v792_v63, %v784_v19  ;;  %v787_v22 = vsel %vm755_vm13, %v725_v11, %v771_v17  ;;  %v826_v63 = vld [vmem:[#allocation2 + $0x98] sm:$0xff]  ;;  %v1676_v27 = vcombine.high %v834_v7, %v838_v8  ;;  %v1675_v12 = vcombine.low %v834_v7, %v838_v8 }
 0x209   : > { %v802_v23 = vmax.f32 %v800_v2, %v787_v22  ;;  %v785_v26 = vsel %vm753_vm14, %v717_v15, %v769_v20  ;;  %v1777_v30 = vpop.f32.mrb[12].mxu1  ;;  %v1659_v2 = vcombine.low %v818_v56, %v822_v57  ;;  %v1668_v4 = vcombine.high %v826_v63, %v830_v0  ;;  %v849_v15 = vld [vmem:[#allocation2 + $0x150] sm:$0xff]  ;;  %v850_v17 = vld [vmem:[#allocation2 + $0x158] sm:$0xff] }
 0x20a   : > { %v801_v33 = vmax.f32 %v799_v5, %v785_v26  ;;  %v738_v34 = vadd.f32 %v1777_v30, %v2190_v32  ;;  %v729_v35 = vpop.f32.mrb[13].mxu1  ;;  %v833_v5 = vld [vmem:[#allocation2 + $0xd0] sm:$0xff]  ;;  %v1667_v25 = vcombine.low %v826_v63, %v830_v0  ;;  %v1683_v20 = vcombine.low %v842_v9, %v846_v10  ;;  %v858_v30 = vld [vmem:[#allocation2 + $0x198] sm:$0xff] }
 0x20b   : > { %v730_v36 = vadd.f32 %v2190_v32, %v729_v35  ;;  %v1778_v37 = vpop.f32.mrb[14].mxu1  ;;  %v1674_v14 = vcombine.high %v833_v5, %v837_v6  ;;  %v1673_v11 = vcombine.low %v833_v5, %v837_v6  ;;  %v861_v26 = vld [vmem:[#allocation2 + $0x1b0] sm:$0xff] }
 0x20c   : > { %vm758_vm15 = vcmp.ge.f32.partialorder %v738_v34, 0.0  ;;  %v774_v38 = vmul.f32 0.2, %v738_v34  ;;  %v741_v39 = vadd.f32 %v1778_v37, %v2190_v32  ;;  %v732_v40 = vpop.f32.mrb[15].mxu1 }
 0x20d   : > { %vm756_vm0 = vcmp.ge.f32.partialorder %v730_v36, 0.0  ;;  %v772_v41 = vmul.f32 0.2, %v730_v36  ;;  %v733_v42 = vadd.f32 %v2190_v32, %v732_v40  ;;  %v1658_v32 = vcombine.high %v817_v54, %v821_v55  ;;  %v866_v40 = vld [vmem:[#allocation2 + $0x1d8] sm:$0xff] }
 0x20e   : > { %v790_v43 = vsel %vm758_vm15, %v738_v34, %v774_v38  ;;  %vm759_vm1 = vcmp.ge.f32.partialorder %v741_v39, 0.0  ;;  %v775_v44 = vmul.f32 0.2, %v741_v39  ;;  %v1689_v34 = vcombine.low %v849_v15, %v853_v16  ;;  %v865_v38 = vld [vmem:[#allocation2 + $0x1d0] sm:$0xff] }
 0x20f   : > { %v797_v45 = vmax.f32 %v795_v18, %v790_v43  ;;  %v788_v46 = vsel %vm756_vm0, %v730_v36, %v772_v41  ;;  %vm757_vm2 = vcmp.ge.f32.partialorder %v733_v42, 0.0  ;;  %v773_v47 = vmul.f32 0.2, %v733_v42  ;;  %v854_v18 = vld [vmem:[#allocation2 + $0x178] sm:$0xff] }
 0x210   : > { %v796_v48 = vmax.f32 %v794_v21, %v788_v46  ;;  %v791_v49 = vsel %vm759_vm1, %v741_v39, %v775_v44  ;;  %v1690_v21 = vcombine.high %v849_v15, %v853_v16  ;;  %v1692_v22 = vcombine.high %v850_v17, %v854_v18  ;;  %v869_v39 = vld [vmem:[#allocation2 + $0x1f0] sm:$0xff]  ;;  %v870_v41 = vld [vmem:[#allocation2 + $0x1f8] sm:$0xff] }
 0x211   : > { %v804_v50 = vmax.f32 %v802_v23, %v791_v49  ;;  %v789_v51 = vsel %vm757_vm2, %v733_v42, %v773_v47  ;;  %v857_v23 = vld [vmem:[#allocation2 + $0x190] sm:$0xff]  ;;  %v1691_v35 = vcombine.low %v850_v17, %v854_v18  ;;  %v1706_v44 = vcombine.high %v865_v38, %v869_v39 }
 0x212   : > { %v798_v52 = vmax.f32 %v796_v48, %v797_v45  ;;  %v803_v53 = vmax.f32 %v801_v33, %v789_v51  ;;  %v862_v33 = vld [vmem:[#allocation2 + $0x1b8] sm:$0xff]  ;;  %v1698_v36 = vcombine.high %v857_v23, %v861_v26  ;;  %v1697_v42 = vcombine.low %v857_v23, %v861_v26 }
 0x213   : > { %v1700_v37 = vcombine.high %v858_v30, %v862_v33  ;;  %v1699_v43 = vcombine.low %v858_v30, %v862_v33  ;;  %v1708_v45 = vcombine.high %v866_v40, %v870_v41  ;;  %v1705_v46 = vcombine.low %v865_v38, %v869_v39 }
 0x214   : > { %v805_v58 = vmax.f32 %v803_v53, %v804_v50  ;;  %v1707_v47 = vcombine.low %v866_v40, %v870_v41  ;;  %v873_v48 = vlaneseq }
 0x216   : > { %v2209_v59 = vpack.c.bf16 %v805_v58, %v798_v52  ;;  %v2223_v49 = vshrl.u32 %v873_v48, 7  ;;  %v2230_v52 = vld [vmem:[%s2323_s6] sm:$0xff] }
 0x218   : > { %1266 = vmatmul.mubr.bf16.vlgmr.msra.gmra.mrb[16].mxu0 %v2209_v59  ;;  %1309 = vmatmul.mubr.bf16.vlgmr.msra.gmra.mrb[16].mxu1 %v2209_v59  ;;  %v875_v50 = vsub.s32 0, %v2223_v49  ;;  %v883_v51 = vsub.s32 2, %v2223_v49  ;;  %v879_v53 = vsub.s32 1, %v2223_v49  ;;  %v887_v54 = vsub.s32 3, %v2223_v49 }
 0x219   : > { %1320 = vmatpush1.bf16.msra.mxu0 %v1649_v28  ;;  %1363 = vmatpush1.bf16.msra.mxu1 %v1651_v29  ;;  %v841_v28 = vld [vmem:[#allocation2 + $0x110] sm:$0xff]  ;;  %v891_v26 = vsub.s32 4, %v2223_v49  ;;  %v899_v30 = vsub.s32 6, %v2223_v49  ;;  %v895_v33 = vsub.s32 5, %v2223_v49 }
 0x21a   : > { %1321 = vmatprep.subr.bf16.mxu0 %v1658_v32  ;;  %1364 = vmatprep.subr.bf16.mxu1 %v1660_v60  ;;  %v845_v29 = vld [vmem:[#allocation2 + $0x130] sm:$0xff]  ;;  %v876_v55 = vrot.slane %v2230_v52, %v875_v50  ;;  %v884_v56 = vrot.slane %v2230_v52, %v883_v51  ;;  %v880_v57 = vrot.slane %v2230_v52, %v879_v53 }
 0x21b   : > { %1351 = vmatprep.mubr.bf16.mxu0 %v1977_v31  ;;  %1394 = vmatprep.mubr.bf16.mxu1 %v1977_v31  ;;  %v1682_v13 = vcombine.high %v841_v28, %v845_v29  ;;  %v1684_v31 = vcombine.high %v842_v9, %v846_v10  ;;  %v1681_v19 = vcombine.low %v841_v28, %v845_v29 }
 0x21c   : > { %v888_v58 = vrot.slane %v2230_v52, %v887_v54 }
 0x21d   : > { %1322 = vmatpush1.bf16.msra.mxu0 %v1657_v1  ;;  %1365 = vmatpush1.bf16.msra.mxu1 %v1659_v2 }
 0x21e   : > { %1323 = vmatprep.subr.bf16.mxu0 %v1666_v3  ;;  %1366 = vmatprep.subr.bf16.mxu1 %v1668_v4 }
 0x221   : > { %1324 = vmatpush1.bf16.msra.mxu0 %v1665_v24  ;;  %1367 = vmatpush1.bf16.msra.mxu1 %v1667_v25 }
 0x222   : > { %1325 = vmatprep.subr.bf16.mxu0 %v1674_v14  ;;  %1368 = vmatprep.subr.bf16.mxu1 %v1676_v27 }
 0x225   : > { %1326 = vmatpush1.bf16.msra.mxu0 %v1673_v11  ;;  %1369 = vmatpush1.bf16.msra.mxu1 %v1675_v12 }
 0x226   : > { %1327 = vmatprep.subr.bf16.mxu0 %v1682_v13  ;;  %1370 = vmatprep.subr.bf16.mxu1 %v1684_v31 }
 0x229   : > { %1328 = vmatpush1.bf16.msra.mxu0 %v1681_v19  ;;  %1371 = vmatpush1.bf16.msra.mxu1 %v1683_v20 }
 0x22a   : > { %1329 = vmatprep.subr.bf16.mxu0 %v1690_v21  ;;  %1372 = vmatprep.subr.bf16.mxu1 %v1692_v22 }
 0x22d   : > { %1330 = vmatpush1.bf16.msra.mxu0 %v1689_v34  ;;  %1373 = vmatpush1.bf16.msra.mxu1 %v1691_v35  ;;  %v903_v34 = vsub.s32 7, %v2223_v49  ;;  %v892_v35 = vrot.slane %v2230_v52, %v891_v26 }
 0x22e   : > { %1331 = vmatprep.subr.bf16.mxu0 %v1698_v36  ;;  %1374 = vmatprep.subr.bf16.mxu1 %v1700_v37  ;;  %v900_v36 = vrot.slane %v2230_v52, %v899_v30  ;;  %v896_v37 = vrot.slane %v2230_v52, %v895_v33 }
 0x22f   : > { %v904_v38 = vrot.slane %v2230_v52, %v903_v34 }
 0x231   : > { %1332 = vmatpush1.bf16.msra.mxu0 %v1697_v42  ;;  %1375 = vmatpush1.bf16.msra.mxu1 %v1699_v43 }
 0x232   : > { %1333 = vmatprep.subr.bf16.mxu0 %v1706_v44  ;;  %1376 = vmatprep.subr.bf16.mxu1 %v1708_v45 }
 0x235   : > { %1334 = vmatpush1.bf16.msra.mxu0 %v1705_v46  ;;  %1377 = vmatpush1.bf16.msra.mxu1 %v1707_v47 }
 0x238   : > { %1352 = vmatmul.mubr.bf16.vlgmr.msra.gmra.mrb[20].mxu0 %v2209_v59  ;;  %1395 = vmatmul.mubr.bf16.vlgmr.msra.gmra.mrb[20].mxu1 %v2209_v59 }
 0x2eb   : > { %v1267_v59 = vpop.f32.mrb[16].mxu0  ;;  %v1310_v32 = vpop.f32.mrb[16].mxu1 }
 0x2ec   : > { %v1268_v60 = vadd.f32 %v1267_v59, %v876_v55  ;;  %v1311_v61 = vadd.f32 %v1310_v32, %v884_v56  ;;  %v1269_v62 = vpop.f32.mrb[17].mxu0  ;;  %v1312_v63 = vpop.f32.mrb[17].mxu1 }
 0x2ed   : > { %v1270_v0 = vadd.f32 %v1269_v62, %v880_v57  ;;  %v1313_v1 = vadd.f32 %v1312_v63, %v888_v58  ;;  %v1271_v2 = vpop.f32.mrb[18].mxu0  ;;  %v1314_v3 = vpop.f32.mrb[18].mxu1 }
 0x2ee   : > { %vm1405_vm3 = vcmp.ge.f32.partialorder %v1268_v60, 0.0  ;;  %v1421_v4 = vmul.f32 0.2, %v1268_v60  ;;  %vm1407_vm4 = vcmp.ge.f32.partialorder %v1311_v61, 0.0  ;;  %v1423_v5 = vmul.f32 0.2, %v1311_v61 }
 0x2ef   : > { %vm1406_vm5 = vcmp.ge.f32.partialorder %v1270_v0, 0.0  ;;  %v1422_v6 = vmul.f32 0.2, %v1270_v0  ;;  %vm1408_vm6 = vcmp.ge.f32.partialorder %v1313_v1, 0.0  ;;  %v1424_v7 = vmul.f32 0.2, %v1313_v1 }
 0x2f0   : > { %v1272_v8 = vadd.f32 %v1271_v2, %v876_v55  ;;  %v1315_v24 = vadd.f32 %v1314_v3, %v884_v56  ;;  %v1273_v25 = vpop.f32.mrb[19].mxu0  ;;  %v1316_v14 = vpop.f32.mrb[19].mxu1  ;;  %v1437_v27 = vsel %vm1405_vm3, %v1268_v60, %v1421_v4  ;;  %v1439_v28 = vsel %vm1407_vm4, %v1311_v61, %v1423_v5 }
 0x2f1   : > { %v1274_v29 = vadd.f32 %v1273_v25, %v880_v57  ;;  %v1317_v9 = vadd.f32 %v1316_v14, %v888_v58  ;;  %v1438_v31 = vsel %vm1406_vm5, %v1270_v0, %v1422_v6  ;;  %v1440_v15 = vsel %vm1408_vm6, %v1313_v1, %v1424_v7 }
 0x2f2   : > { %vm1413_vm7 = vcmp.ge.f32.partialorder %v1272_v8, 0.0  ;;  %v1429_v10 = vmul.f32 0.2, %v1272_v8  ;;  %vm1415_vm8 = vcmp.ge.f32.partialorder %v1315_v24, 0.0  ;;  %v1431_v11 = vmul.f32 0.2, %v1315_v24 }
 0x2f3   : > { %vm1414_vm9 = vcmp.ge.f32.partialorder %v1274_v29, 0.0  ;;  %v1430_v12 = vmul.f32 0.2, %v1274_v29  ;;  %vm1416_vm10 = vcmp.ge.f32.partialorder %v1317_v9, 0.0  ;;  %v1432_v13 = vmul.f32 0.2, %v1317_v9 }
 0x2f4   : > { %v1445_v16 = vsel %vm1413_vm7, %v1272_v8, %v1429_v10  ;;  %v1447_v17 = vsel %vm1415_vm8, %v1315_v24, %v1431_v11 }
 0x2f5   : > { %v1453_v18 = vmax.f32 %v1437_v27, %v1445_v16  ;;  %v1455_v19 = vmax.f32 %v1439_v28, %v1447_v17  ;;  %v1446_v20 = vsel %vm1414_vm9, %v1274_v29, %v1430_v12  ;;  %v1448_v21 = vsel %vm1416_vm10, %v1317_v9, %v1432_v13 }
 0x2f6   : > { %v1454_v22 = vmax.f32 %v1438_v31, %v1446_v20  ;;  %v1456_v23 = vmax.f32 %v1440_v15, %v1448_v21 }
 0x2f7   : > { %1489 = vst [vmem:[%s2243_s20] sm:$0xff] %v1453_v18  ;;  %1491 = vst [vmem:[%s2243_s20 + $0x10] sm:$0xff] %v1455_v19 }
 0x2f8   : > { %1490 = vst [vmem:[%s2243_s20 + $0x8] sm:$0xff] %v1454_v22  ;;  %1492 = vst [vmem:[%s2243_s20 + $0x18] sm:$0xff] %v1456_v23 }
 0x30b   : > { %v1353_v39 = vpop.f32.mrb[20].mxu0  ;;  %v1396_v40 = vpop.f32.mrb[20].mxu1 }
 0x30c   : > { %v1354_v41 = vadd.f32 %v1353_v39, %v892_v35  ;;  %v1397_v42 = vadd.f32 %v1396_v40, %v900_v36  ;;  %v1355_v43 = vpop.f32.mrb[21].mxu0  ;;  %v1398_v44 = vpop.f32.mrb[21].mxu1 }
 0x30d   : > { %v1356_v45 = vadd.f32 %v1355_v43, %v896_v37  ;;  %v1399_v46 = vadd.f32 %v1398_v44, %v904_v38  ;;  %v1357_v47 = vpop.f32.mrb[22].mxu0  ;;  %v1400_v48 = vpop.f32.mrb[22].mxu1 }
 0x30e   : > { %vm1409_vm11 = vcmp.ge.f32.partialorder %v1354_v41, 0.0  ;;  %v1425_v49 = vmul.f32 0.2, %v1354_v41  ;;  %vm1411_vm12 = vcmp.ge.f32.partialorder %v1397_v42, 0.0  ;;  %v1427_v50 = vmul.f32 0.2, %v1397_v42 }
 0x30f   : > { %vm1410_vm13 = vcmp.ge.f32.partialorder %v1356_v45, 0.0  ;;  %v1426_v51 = vmul.f32 0.2, %v1356_v45  ;;  %vm1412_vm14 = vcmp.ge.f32.partialorder %v1399_v46, 0.0  ;;  %v1428_v53 = vmul.f32 0.2, %v1399_v46 }
 0x310   : > { %v1358_v54 = vadd.f32 %v1357_v47, %v892_v35  ;;  %v1401_v52 = vadd.f32 %v1400_v48, %v900_v36  ;;  %v1359_v55 = vpop.f32.mrb[23].mxu0  ;;  %v1402_v56 = vpop.f32.mrb[23].mxu1  ;;  %v1441_v57 = vsel %vm1409_vm11, %v1354_v41, %v1425_v49  ;;  %v1443_v58 = vsel %vm1411_vm12, %v1397_v42, %v1427_v50 }
 0x311   : > { %v1360_v59 = vadd.f32 %v1359_v55, %v896_v37  ;;  %v1403_v32 = vadd.f32 %v1402_v56, %v904_v38  ;;  %v1442_v0 = vsel %vm1410_vm13, %v1356_v45, %v1426_v51  ;;  %v1444_v1 = vsel %vm1412_vm14, %v1399_v46, %v1428_v53 }
 0x312   : > { %vm1417_vm15 = vcmp.ge.f32.partialorder %v1358_v54, 0.0  ;;  %v1433_v60 = vmul.f32 0.2, %v1358_v54  ;;  %vm1419_vm0 = vcmp.ge.f32.partialorder %v1401_v52, 0.0  ;;  %v1435_v61 = vmul.f32 0.2, %v1401_v52 }
 0x313   : > { %vm1418_vm1 = vcmp.ge.f32.partialorder %v1360_v59, 0.0  ;;  %v1434_v62 = vmul.f32 0.2, %v1360_v59  ;;  %vm1420_vm2 = vcmp.ge.f32.partialorder %v1403_v32, 0.0  ;;  %v1436_v63 = vmul.f32 0.2, %v1403_v32 }
 0x314   : > { %v1449_v2 = vsel %vm1417_vm15, %v1358_v54, %v1433_v60  ;;  %v1451_v3 = vsel %vm1419_vm0, %v1401_v52, %v1435_v61 }
 0x315   : > { %v1457_v4 = vmax.f32 %v1441_v57, %v1449_v2  ;;  %v1459_v5 = vmax.f32 %v1443_v58, %v1451_v3  ;;  %v1450_v6 = vsel %vm1418_vm1, %v1360_v59, %v1434_v62  ;;  %v1452_v7 = vsel %vm1420_vm2, %v1403_v32, %v1436_v63 }
 0x316   : > { %v1458_v8 = vmax.f32 %v1442_v0, %v1450_v6  ;;  %v1460_v24 = vmax.f32 %v1444_v1, %v1452_v7 }
 0x317   : > { %1493 = vst [vmem:[%s2243_s20 + $0x20] sm:$0xff] %v1457_v4  ;;  %1495 = vst [vmem:[%s2243_s20 + $0x30] sm:$0xff] %v1459_v5 }
 0x318   : > { %1494 = vst [vmem:[%s2243_s20 + $0x28] sm:$0xff] %v1458_v8  ;;  %1496 = vst [vmem:[%s2243_s20 + $0x38] sm:$0xff] %v1460_v24 }
 0x319   : > { %1903 = shalt.err (!%p1900_p6)
}
 0x31a   : > { %s1904_s16 = scalar_lea.hbm %s2264_s19, 1024  ;;  %s1908_s20 = scalar_lea.hbm %s2324_s7, 2048 }
 0x31b   : > { %p1905_p7 = scmp.ne.s32.totalorder %s2264_s19, %s1904_s16  ;;  %p1909_p0 = scmp.lt.u32.totalorder %s2264_s19, %s2324_s7 }
 0x31c   : > { %p1910_p2 = scmp.lt.u32.totalorder %s1908_s20, %s1904_s16  ;;  %p1912_p8 = scmp.lt.u32.totalorder %s1904_s16, %s2264_s19 }
 0x31d   : > { %p1906_p9 = pnand %p1905_p7, %p2336_p10 }
 0x31e   : > { %p1911_p4 = por %p1910_p2, %p1909_p0 }
 0x31f   : > { %p1907_p12 = pneg %p1906_p9 }
 0x320   : > { %p1913_p11 = por %p1912_p8, %p1911_p4 }
 0x322   : > { %p1914_p13 = pnand %p1913_p11, %p1907_p12 }
 0x324   : > { %1917 = shalt.err (!%p1914_p13)
}
 0x325   : > { %1784 = dma.vmem_to_hbm [thread:$0]  (%p2336_p10), %s2266_s23, 1024, %s2264_s19, %s1498_s8  }
 0x326 PF: > { %p1796_p1 = scmp.ge.s32.totalorder %s1972_s29, 2  ;;  %s1526_s30 = sand.u32 1, %s1952_s24  }
 0x327   : > { %p2337_p3 = scmp.ne.s32.totalorder %s2330_s13, 0  ;;  %s1527_s27 = scalar_lea.sflag [#allocation4], %s1526_s30 }
 0x329   : > { %p1791_p5 = pnand %p1796_p1, %p2337_p3 }
 0x32b   : > { %1947 = dma.done.wait (!%p1791_p5), %s1527_s27, 1024  }
 0x32c   : > { %1949 = vsyncadd (!%p1791_p5), %s1527_s27, 4294966272  ;;  %s21_s29 = sadd.s32 1, %s1972_s29   ;;  %s2338_s24 = smov %s1956_s25 }
 0x32d   : > { %p18_p6 = scmp.ge.s32.totalorder %s21_s29, 4   ;;  %s2339_s25 = smov %s1960_s26 }
 0x32e   : > { %s2340_s26 = smov %s2072_s14  ;;  %s2341_s27 = smov %s1968_s28 }
 0x32f   : > { %s2342_s28 = smov %s2344_s9  ;;  %20 = sbr.rel (!%p18_p6) target bundleno = 5 (0x5), region = 92 }
 0x336   :  { %1532 = vsyncpa [#allocation3], 1 }
 0x337   :  { %1534 = vsyncpa [#allocation3 + $0x1], 1 }
 0x338   :  { %1535 = vsyncpa [#allocation4], 1 }
 0x339   :  { %1537 = vsyncpa [#allocation4 + $0x1], 1 }

</bundles_post_ra>
